<compile_context>
chip_gen: v7x
topology: tpu7x:2x2x1
jax: 0.10.0
libtpu: 0.0.40
codegen_flags: <defaults>
</compile_context>

<pallas_src>
import jax
import jax.numpy as jnp
from jax.experimental import pallas as pl
from jax.experimental.pallas import tpu as pltpu

IN_DIM = 2      # l1 fan-in
OUT_DIM = 3     # l2 fan-out
OUT_SUB = 8     # out_dim padded to one sublane group (lane axis stays = batch)
TB_MAX = 4096   # max batch-lane tile


def _round_up(n, m):
    return ((n + m - 1) // m) * m


def _choose_tile(B):
    """Pick (TB, B_pad): lane tile and padded batch."""
    if B <= TB_MAX:
        return B, B  # single full-extent tile (legal for any lane width)
    # Target >= 8 grid steps (v7x: 2 TCs x >= 4 steps each), cap tile at TB_MAX.
    tb = min(TB_MAX, max(128, _round_up(pl.cdiv(B, 8), 128)))
    return tb, _round_up(B, tb)


def qnetwork_kernel(x_ref, w1_ref, b1_ref, w2_ref, b2_ref, out_ref):
    # x_ref : [2, TB]   (batch on lanes)
    # w1_ref: [H, 2]    (PyTorch [out, in] layout)
    # b1_ref: [H, 1]
    # w2_ref: [8, H]    (PyTorch [out, in], rows zero-padded 3 -> 8)
    # b2_ref: [8, 1]
    # out   : [8, TB]
    x0 = x_ref[0:1, :]                                # [1, TB] sublane-broadcast row
    x1 = x_ref[1:2, :]                                # [1, TB]

    # Layer 1 on the VPU: h_T = w1 @ x_T + b1, K=2 expanded as two FMAs.
    h = (w1_ref[:, 0:1] * x0
         + w1_ref[:, 1:2] * x1
         + b1_ref[...])                               # [H, TB]
    h = jnp.maximum(h, 0.0)                           # ReLU

    # Layer 2 on the MXU: lane-dense [8, TB] result (batch on lanes).
    y = jnp.dot(w2_ref[...], h,
                preferred_element_type=jnp.float32)   # [8, TB]
    out_ref[...] = (y + b2_ref[...]).astype(out_ref.dtype)


def prepare_params(w1, b1, w2, b2):
    """One-time prep (hoisted out of the forward): pad/reshape to kernel layout.

    Inputs use PyTorch nn.Linear layout: w1 [H, 2], b1 [H], w2 [3, H], b2 [3].
    """
    H = w1.shape[0]
    w2p = jnp.pad(w2, ((0, OUT_SUB - w2.shape[0]), (0, 0)))          # [8, H]
    b2p = jnp.pad(b2, (0, OUT_SUB - b2.shape[0])).reshape(OUT_SUB, 1)  # [8, 1]
    return w1, b1.reshape(H, 1), w2p, b2p


def qnetwork_forward(x, params):
    """x: [B, 2] -> [B, 3]."""
    w1, b1, w2p, b2p = params
    B = x.shape[0]
    H = w1.shape[0]

    TB, B_pad = _choose_tile(B)

    # Batch on the lane axis; pad lanes only when tiling requires it.
    xt = x.T                                                        # [2, B]
    if B_pad != B:
        xt = jnp.pad(xt, ((0, 0), (0, B_pad - B)))

    out = pl.pallas_call(
        qnetwork_kernel,
        out_shape=jax.ShapeDtypeStruct((OUT_SUB, B_pad), jnp.float32),
        grid=(B_pad // TB,),
        in_specs=[
            pl.BlockSpec((IN_DIM, TB), lambda i: (0, i)),    # x_T: tiled over batch lanes
            pl.BlockSpec((H, IN_DIM), lambda i: (0, 0)),     # w1: resident
            pl.BlockSpec((H, 1), lambda i: (0, 0)),          # b1: resident
            pl.BlockSpec((OUT_SUB, H), lambda i: (0, 0)),    # w2 (row-padded): resident
            pl.BlockSpec((OUT_SUB, 1), lambda i: (0, 0)),    # b2 (padded): resident
        ],
        out_specs=pl.BlockSpec((OUT_SUB, TB), lambda i: (0, i)),
        compiler_params=pltpu.CompilerParams(
            dimension_semantics=("parallel",),   # v7x: split batch across 2 TCs
        ),
    )(xt, w1, b1, w2p, b2p)

    # Drop padded output rows / batch lanes and return row-major [B, 3].
    return out[:OUT_DIM, :B].T


def init_params(key, num_hidden=128):
    # PyTorch default Linear init (uniform in [-1/sqrt(fan_in), 1/sqrt(fan_in)]),
    # stored in PyTorch state_dict layout: weight [out, in], bias [out].
    k1, k2, k3, k4 = jax.random.split(key, 4)
    lim1 = 1.0 / jnp.sqrt(float(IN_DIM))
    lim2 = 1.0 / jnp.sqrt(float(num_hidden))
    w1 = jax.random.uniform(k1, (num_hidden, IN_DIM), jnp.float32, -lim1, lim1)
    b1 = jax.random.uniform(k2, (num_hidden,), jnp.float32, -lim1, lim1)
    w2 = jax.random.uniform(k3, (OUT_DIM, num_hidden), jnp.float32, -lim2, lim2)
    b2 = jax.random.uniform(k4, (OUT_DIM,), jnp.float32, -lim2, lim2)
    return w1, b1, w2, b2


if __name__ == "__main__":
    key = jax.random.PRNGKey(0)
    k_x, k_p = jax.random.split(key)

    batch = 8
    num_hidden = 128
    x = jax.random.normal(k_x, (batch, IN_DIM), dtype=jnp.float32)
    w1, b1, w2, b2 = init_params(k_p, num_hidden)

    params = prepare_params(w1, b1, w2, b2)   # one-time; hoisted out of forward
    out = qnetwork_forward(x, params)
    jax.block_until_ready(out)

    # Pure-JAX reference (PyTorch layout: y = relu(x @ w1.T + b1) @ w2.T + b2).
    ref = jnp.maximum(x @ w1.T + b1, 0.0) @ w2.T + b2
    assert out.shape == (batch, OUT_DIM)
    assert jnp.allclose(out, ref, atol=1e-5, rtol=1e-5)

    print("KERNEL_OK")
</pallas_src>

<mosaic_0001>
module attributes {stable_mosaic.version = 11 : i64} {
  func.func @qnetwork_kernel(%arg0: i32, %arg1: memref<2x8xf32, #tpu.memory_space<vmem>>, %arg2: memref<128x2xf32, #tpu.memory_space<vmem>>, %arg3: memref<128x1xf32, #tpu.memory_space<vmem>>, %arg4: memref<8x128xf32, #tpu.memory_space<vmem>>, %arg5: memref<8x1xf32, #tpu.memory_space<vmem>>, %arg6: memref<8x8xf32, #tpu.memory_space<vmem>>) attributes {dimension_semantics = [#tpu.dimension_semantics<parallel>], iteration_bounds = array<i64: 1>, scalar_prefetch = 0 : i64, scratch_operands = 0 : i64, tpu.core_type = #tpu.core_type<tc>, window_params = [{transform_indices = @transform_0, window_bounds = array<i64: 2, 8>}, {pipeline_mode = #tpu.pipeline_mode<synchronous>, transform_indices = @transform_1, window_bounds = array<i64: 128, 2>}, {pipeline_mode = #tpu.pipeline_mode<synchronous>, transform_indices = @transform_2, window_bounds = array<i64: 128, 1>}, {pipeline_mode = #tpu.pipeline_mode<synchronous>, transform_indices = @transform_3, window_bounds = array<i64: 8, 128>}, {pipeline_mode = #tpu.pipeline_mode<synchronous>, transform_indices = @transform_4, window_bounds = array<i64: 8, 1>}, {transform_indices = @transform_5, window_bounds = array<i64: 8, 8>}]} {
    %c0 = arith.constant 0 : index
    %c0_0 = arith.constant 0 : index
    %0 = vector.load %arg1[%c0, %c0_0] : memref<2x8xf32, #tpu.memory_space<vmem>>, vector<1x8xf32>
    %c1 = arith.constant 1 : index
    %c0_1 = arith.constant 0 : index
    %1 = vector.load %arg1[%c1, %c0_1] : memref<2x8xf32, #tpu.memory_space<vmem>>, vector<1x8xf32>
    %c0_2 = arith.constant 0 : index
    %c0_3 = arith.constant 0 : index
    %2 = vector.load %arg2[%c0_2, %c0_3] : memref<128x2xf32, #tpu.memory_space<vmem>>, vector<128x1xf32>
    %3 = vector.broadcast %2 : vector<128x1xf32> to vector<128x8xf32>
    %4 = vector.broadcast %0 : vector<1x8xf32> to vector<128x8xf32>
    %5 = arith.mulf %3, %4 : vector<128x8xf32>
    %c0_4 = arith.constant 0 : index
    %c1_5 = arith.constant 1 : index
    %6 = vector.load %arg2[%c0_4, %c1_5] : memref<128x2xf32, #tpu.memory_space<vmem>>, vector<128x1xf32>
    %7 = vector.broadcast %6 : vector<128x1xf32> to vector<128x8xf32>
    %8 = vector.broadcast %1 : vector<1x8xf32> to vector<128x8xf32>
    %9 = arith.mulf %7, %8 : vector<128x8xf32>
    %10 = arith.addf %5, %9 : vector<128x8xf32>
    %c0_6 = arith.constant 0 : index
    %c0_7 = arith.constant 0 : index
    %11 = vector.load %arg3[%c0_6, %c0_7] : memref<128x1xf32, #tpu.memory_space<vmem>>, vector<128x1xf32>
    %12 = vector.broadcast %11 : vector<128x1xf32> to vector<128x8xf32>
    %13 = arith.addf %10, %12 : vector<128x8xf32>
    %cst = arith.constant 0.000000e+00 : f32
    %14 = vector.broadcast %cst : f32 to vector<128x8xf32>
    %15 = arith.maximumf %13, %14 : vector<128x8xf32>
    %c0_8 = arith.constant 0 : index
    %c0_9 = arith.constant 0 : index
    %16 = vector.load %arg4[%c0_8, %c0_9] : memref<8x128xf32, #tpu.memory_space<vmem>>, vector<8x128xf32>
    %cst_10 = arith.constant dense<0.000000e+00> : vector<8x8xf32>
    %17 = tpu.matmul %16, %15, %cst_10 {dimension_numbers = #tpu.dot_dimension_numbers<[1], [0], [0], [1], [0, 0, 1, 1], [], []>} : vector<8x128xf32>, vector<128x8xf32>, vector<8x8xf32> -> vector<8x8xf32>
    %c0_11 = arith.constant 0 : index
    %c0_12 = arith.constant 0 : index
    %18 = vector.load %arg5[%c0_11, %c0_12] : memref<8x1xf32, #tpu.memory_space<vmem>>, vector<8x1xf32>
    %19 = vector.broadcast %18 : vector<8x1xf32> to vector<8x8xf32>
    %20 = arith.addf %17, %19 : vector<8x8xf32>
    %c0_13 = arith.constant 0 : index
    %c0_14 = arith.constant 0 : index
    %21 = vector.load %arg6[%c0_13, %c0_14] : memref<8x8xf32, #tpu.memory_space<vmem>>, vector<8x8xf32>
    tpu.vector_store %arg6[%c0_13, %c0_14], %20 {strides = array<i32>} : memref<8x8xf32, #tpu.memory_space<vmem>>, vector<8x8xf32>,
    return
  }
  func.func @transform_0(%arg0: i32) -> (i32, i32) {
    %c0_i32 = arith.constant 0 : i32
    %c0_i32_0 = arith.constant 0 : i32
    return %c0_i32, %arg0 : i32, i32
  }
  func.func @transform_1(%arg0: i32) -> (i32, i32) {
    %c0_i32 = arith.constant 0 : i32
    %c0_i32_0 = arith.constant 0 : i32
    %c0_i32_1 = arith.constant 0 : i32
    return %c0_i32, %c0_i32_0 : i32, i32
  }
  func.func @transform_2(%arg0: i32) -> (i32, i32) {
    %c0_i32 = arith.constant 0 : i32
    %c0_i32_0 = arith.constant 0 : i32
    %c0_i32_1 = arith.constant 0 : i32
    return %c0_i32, %c0_i32_0 : i32, i32
  }
  func.func @transform_3(%arg0: i32) -> (i32, i32) {
    %c0_i32 = arith.constant 0 : i32
    %c0_i32_0 = arith.constant 0 : i32
    %c0_i32_1 = arith.constant 0 : i32
    return %c0_i32, %c0_i32_0 : i32, i32
  }
  func.func @transform_4(%arg0: i32) -> (i32, i32) {
    %c0_i32 = arith.constant 0 : i32
    %c0_i32_0 = arith.constant 0 : i32
    %c0_i32_1 = arith.constant 0 : i32
    return %c0_i32, %c0_i32_0 : i32, i32
  }
  func.func @transform_5(%arg0: i32) -> (i32, i32) {
    %c0_i32 = arith.constant 0 : i32
    %c0_i32_0 = arith.constant 0 : i32
    return %c0_i32, %arg0 : i32, i32
  }
}

</mosaic_0001>

<bundles_post_ra>
// kernel: tpu_custom_call.1
= control target key start
LH: loop header
LB: loop body
LE: loop exit
PB: predicated region body
PF: predicated region fallthrough
CT: control target
= control target key end

     0   :  { %v586_v2 = vmov 1   ;;  %v587_v7 = vmov 0   ;;  %s823_s0 = inlined_call_operand.vmem [shape: f32[2,8], index: 0, kind: input, shape index: {}]   ;;  %s824_s1 = inlined_call_operand.vmem [shape: f32[128,2], index: 1, kind: input, shape index: {}]   ;;  %s825_s2 = inlined_call_operand.vmem [shape: f32[128,1], index: 2, kind: input, shape index: {}]   ;;  %s826_s3 = inlined_call_operand.vmem [shape: f32[8,128], index: 3, kind: input, shape index: {}]   ;;  %s827_s4 = inlined_call_operand.vmem [shape: f32[8,1], index: 4, kind: input, shape index: {}]   ;;  %s828_s5 = inlined_call_operand.hbm [shape: f32[8,8], index: 5, kind: output, shape index: {}]  }
   0x1   :  { %v25_v0 = vld [vmem:[%s824_s1 + $0x10] sm:$0xff]  ;;  %v23_v1 = vld [vmem:[%s824_s1] sm:$0xff]  ;;  %546 = vset.pattern.permute.xlu0 %v586_v2  ;;  %544 = vset.pattern.permute.xlu1 %v586_v2  ;;  %v24_v4 = vld [vmem:[%s824_s1 + $0x8] sm:$0xff] }
   0x2   :  { %148 = vperm.xlu0 %546, %v25_v0   ;;  %140 = vperm.xlu1 %544, %v23_v1   ;;  %v27_v3 = vld [vmem:[%s824_s1 + $0x20] sm:$0xff]  ;;  %v29_v5 = vld [vmem:[%s824_s1 + $0x30] sm:$0xff]  ;;  %v26_v6 = vld [vmem:[%s824_s1 + $0x18] sm:$0xff] }
   0x3   :  { %v31_v8 = vld [vmem:[%s824_s1 + $0x40] sm:$0xff] }
   0x6   :  { %156 = vperm.xlu0 %546, %v27_v3   ;;  %144 = vperm.xlu1 %544, %v24_v4  }
   0xa   :  { %164 = vperm.xlu0 %546, %v29_v5   ;;  %545 = vset.pattern.permute.xlu1 %v587_v7 }
   0xb   :  { %56 = vperm.xlu1 %545, %v26_v6  }
   0xc   :  { %10 = vsyncpa [#allocation3], 0  ;;  %v33_v9 = vld [vmem:[%s824_s1 + $0x50] sm:$0xff]  ;;  %v239_v10 = vld [vmem:[%s825_s2] sm:$0xff]  ;;  %v588_v19 = vmov 0.0|0.0   ;;  %vm589_vm0 = vmmov 0  }
   0xd   :  { %v35_v11 = vld [vmem:[%s824_s1 + $0x60] sm:$0xff]  ;;  %v660_v12 = vld [vmem:[%s824_s1 + $0x70] sm:$0xff]  ;;  %v28_v13 = vld [vmem:[%s824_s1 + $0x28] sm:$0xff]  ;;  %514 = vmatprep.subr.bf16.mxu0 %v588_v19  ;;  %v590_v44 = vmov 0.0   ;;  %s591_s11 = smov [#allocation2]   ;;  %vm444_vm1 = vcmask 64512  }
   0xe   :  { %172 = vperm.xlu0 %546, %v31_v8   ;;  %v241_v14 = vld [vmem:[%s825_s2 + $0x10] sm:$0xff]  ;;  %v240_v15 = vld [vmem:[%s825_s2 + $0x8] sm:$0xff]  ;;  %v242_v16 = vld [vmem:[%s825_s2 + $0x18] sm:$0xff]  ;;  %511 = vmatprep.mubr.msk.f32.mxu0 %vm589_vm0, %v590_v44  ;;  %s452_s12 = sshll.u32 %s591_s11, 4  ;;  %s453_s12 = int_to_ptr.vmem [resolvable:$true] %s452_s12 }
   0xf   :  { %547 = vset.pattern.permute.xlu1 %v586_v2  ;;  %v30_v17 = vld [vmem:[%s824_s1 + $0x38] sm:$0xff]  ;;  %v244_v18 = vld [vmem:[%s825_s2 + $0x28] sm:$0xff]  ;;  %v243_v21 = vld [vmem:[%s825_s2 + $0x20] sm:$0xff]  ;;  %s562_s13 = scalar_lea.vmem %s453_s12, 128  ;;  %p567_p1 = scmp.lt.s32.totalorder %s453_s12, %s453_s12 }
  0x10   :  { %152 = vperm.xlu1 %547, %v26_v6   ;;  %v246_v20 = vld [vmem:[%s825_s2 + $0x38] sm:$0xff]  ;;  %v248_v22 = vld [vmem:[%s825_s2 + $0x48] sm:$0xff]  ;;  %v368_v26 = vld [vmem:[%s827_s4] sm:$0xff]  ;;  %p563_p0 = scmp.ne.s32.totalorder %s453_s12, %s562_s13  ;;  %p568_p2 = scmp.lt.s32.totalorder %s562_s13, %s562_s13 }
  0x11   :  { %v250_v23 = vld [vmem:[%s825_s2 + $0x58] sm:$0xff]  ;;  %v32_v24 = vld [vmem:[%s824_s1 + $0x48] sm:$0xff]  ;;  %v245_v27 = vld [vmem:[%s825_s2 + $0x30] sm:$0xff] }
  0x12   :  { %180 = vperm.xlu0 %546, %v33_v9   ;;  %v252_v25 = vld [vmem:[%s825_s2 + $0x68] sm:$0xff]  ;;  %v34_v28 = vld [vmem:[%s824_s1 + $0x58] sm:$0xff]  ;;  %v247_v29 = vld [vmem:[%s825_s2 + $0x40] sm:$0xff]  ;;  %p569_p3 = por %p568_p2, %p567_p1 }
  0x13   :  { %v36_v30 = vld [vmem:[%s824_s1 + $0x68] sm:$0xff]  ;;  %v249_v31 = vld [vmem:[%s825_s2 + $0x50] sm:$0xff]  ;;  %v38_v32 = vld [vmem:[%s824_s1 + $0x78] sm:$0xff] }
  0x14   :  { %548 = vset.pattern.permute.xlu1 %v587_v7  ;;  %v251_v33 = vld [vmem:[%s825_s2 + $0x60] sm:$0xff]  ;;  %v253_v36 = vld [vmem:[%s825_s2 + $0x70] sm:$0xff]  ;;  %v254_v39 = vld [vmem:[%s825_s2 + $0x78] sm:$0xff]  ;;  %p570_p4 = pnand %p569_p3, %p563_p0 }
  0x15   :  { %257 = vperm.xlu1 %548, %v239_v10   ;;  %v757_v52 = vld [vmem:[%s823_s0 + $0x1] ss:$0 sm:$0xff]  ;;  %v762_v53 = vld [vmem:[%s823_s0] ss:$0 sm:$0xff] }
  0x16   :  { %188 = vperm.xlu0 %546, %v35_v11  }
  0x19   :  { %61 = vperm.xlu1 %548, %v27_v3  }
  0x1a   :  { %196 = vperm.xlu0 %546, %v660_v12  }
  0x1d   :  { %66 = vperm.xlu1 %548, %v28_v13  }
  0x1e   :  { %559 = vset.pattern.permute.xlu0 %v587_v7 }
  0x1f   :  { %41 = vperm.xlu0 %559, %v23_v1  }
  0x21   :  { %549 = vset.pattern.permute.xlu1 %v586_v2 }
  0x22   :  { %160 = vperm.xlu1 %549, %v28_v13  }
  0x23   :  { %46 = vperm.xlu0 %559, %v24_v4  }
  0x26   :  { %550 = vset.pattern.permute.xlu1 %v587_v7 }
  0x27   :  { %51 = vperm.xlu0 %559, %v25_v0   ;;  %267 = vperm.xlu1 %550, %v241_v14  }
  0x2b   :  { %262 = vperm.xlu0 %559, %v240_v15   ;;  %71 = vperm.xlu1 %550, %v29_v5  }
  0x2f   :  { %272 = vperm.xlu0 %559, %v242_v16   ;;  %76 = vperm.xlu1 %550, %v30_v17  }
  0x33   :  { %282 = vperm.xlu0 %559, %v244_v18   ;;  %551 = vset.pattern.permute.xlu1 %v586_v2 }
  0x34   :  { %168 = vperm.xlu1 %551, %v30_v17  }
  0x37   :  { %292 = vperm.xlu0 %559, %v246_v20  }
  0x38   :  { %552 = vset.pattern.permute.xlu1 %v587_v7 }
  0x39   :  { %277 = vperm.xlu1 %552, %v243_v21  }
  0x3b   :  { %302 = vperm.xlu0 %559, %v248_v22  }
  0x3d   :  { %81 = vperm.xlu1 %552, %v31_v8  }
  0x3f   :  { %312 = vperm.xlu0 %559, %v250_v23  }
  0x41   :  { %86 = vperm.xlu1 %552, %v32_v24  }
  0x43   :  { %322 = vperm.xlu0 %559, %v252_v25  }
  0x45   :  { %553 = vset.pattern.permute.xlu1 %v586_v2 }
  0x46   :  { %176 = vperm.xlu1 %553, %v32_v24  }
  0x47   :  { %371 = vperm.xlu0 %559, %v368_v26  }
  0x4a   :  { %554 = vset.pattern.permute.xlu1 %v587_v7 }
  0x4b   :  { %287 = vperm.xlu1 %554, %v245_v27  }
  0x4f   :  { %91 = vperm.xlu1 %554, %v33_v9  }
  0x53   :  { %96 = vperm.xlu1 %554, %v34_v28  }
  0x57   :  { %555 = vset.pattern.permute.xlu1 %v586_v2 }
  0x58   :  { %184 = vperm.xlu1 %555, %v34_v28  }
  0x5c   :  { %556 = vset.pattern.permute.xlu1 %v587_v7 }
  0x5d   :  { %297 = vperm.xlu1 %556, %v247_v29  }
  0x61   :  { %101 = vperm.xlu1 %556, %v35_v11  }
  0x65   :  { %106 = vperm.xlu1 %556, %v36_v30  }
  0x69   :  { %557 = vset.pattern.permute.xlu1 %v586_v2 }
  0x6a   :  { %192 = vperm.xlu1 %557, %v36_v30  }
  0x6e   :  { %558 = vset.pattern.permute.xlu1 %v587_v7 }
  0x6f   :  { %307 = vperm.xlu1 %558, %v249_v31  }
  0x73   :  { %111 = vperm.xlu1 %558, %v660_v12  }
  0x77   :  { %116 = vperm.xlu1 %558, %v38_v32  }
  0x7b   :  { %560 = vset.pattern.permute.xlu1 %v586_v2 }
  0x7c   :  { %200 = vperm.xlu1 %560, %v38_v32  }
  0x80   :  { %561 = vset.pattern.permute.xlu1 %v587_v7 }
  0x81   :  { %317 = vperm.xlu1 %561, %v251_v33   ;;  %v141_v34 = vpop.permute.xlu1 %140  ;;  %v149_v35 = vpop.permute.xlu0 %148 }
  0x82   :  { %v207_v57 = vmul.f32 %v757_v52, %v141_v34  ;;  %v209_v58 = vmul.f32 %v757_v52, %v149_v35 }
  0x85   :  { %327 = vperm.xlu1 %561, %v253_v36   ;;  %v145_v37 = vpop.permute.xlu1 %144  ;;  %v157_v38 = vpop.permute.xlu0 %156 }
  0x86   :  { %v208_v63 = vmul.f32 %v757_v52, %v145_v37  ;;  %v211_v21 = vmul.f32 %v757_v52, %v157_v38 }
  0x89   :  { %332 = vperm.xlu1 %561, %v254_v39   ;;  %v744_v40 = vpop.permute.xlu0 %164 }
  0x8a   :  { %v57_v41 = vpop.permute.xlu1 %56  ;;  %v213_v39 = vmul.f32 %v757_v52, %v744_v40 }
  0x8b   :  { %v126_v7 = vmul.f32 %v762_v53, %v57_v41 }
  0x8d   :  { %v746_v42 = vpop.permute.xlu0 %172 }
  0x8f   :  { %v153_v43 = vpop.permute.xlu1 %152 }
  0x90   :  { %v210_v1 = vmul.f32 %v757_v52, %v153_v43 }
  0x91   :  { %v748_v45 = vpop.permute.xlu0 %180 }
  0x92   :  { %v226_v11 = vadd.f32 %v210_v1, %v126_v7 }
  0x94   :  { %v258_v46 = vpop.permute.xlu1 %257 }
  0x95   :  { %v750_v47 = vpop.permute.xlu0 %188 }
  0x98   :  { %v62_v48 = vpop.permute.xlu1 %61 }
  0x99   :  { %v752_v49 = vpop.permute.xlu0 %196  ;;  %v127_v22 = vmul.f32 %v762_v53, %v62_v48 }
  0x9b   :  { %v227_v29 = vadd.f32 %v211_v21, %v127_v22 }
  0x9c   :  { %v67_v50 = vpop.permute.xlu1 %66 }
  0x9d   :  { %v128_v23 = vmul.f32 %v762_v53, %v67_v50 }
  0x9e   :  { %v42_v51 = vpop.permute.xlu0 %41 }
  0x9f   :  { %v123_v54 = vmul.f32 %v762_v53, %v42_v51 }
  0xa1   :  { %v161_v55 = vpop.permute.xlu1 %160  ;;  %v223_v59 = vadd.f32 %v207_v57, %v123_v54 }
  0xa2   :  { %v47_v56 = vpop.permute.xlu0 %46  ;;  %v212_v17 = vmul.f32 %v757_v52, %v161_v55 }
  0xa3   :  { %v124_v60 = vmul.f32 %v762_v53, %v47_v56  ;;  %v335_v4 = vadd.f32 %v258_v46, %v223_v59 }
  0xa4   :  { %v228_v27 = vadd.f32 %v212_v17, %v128_v23 }
  0xa5   :  { %v224_v3 = vadd.f32 %v208_v63, %v124_v60  ;;  %v351_v12 = vmax.f32 %v335_v4, 0.0 }
  0xa6   :  { %v52_v61 = vpop.permute.xlu0 %51  ;;  %v268_v62 = vpop.permute.xlu1 %267 }
  0xa7   :  { %v125_v0 = vmul.f32 %v762_v53, %v52_v61  ;;  %v215_v61 = vmul.f32 %v757_v52, %v746_v42 }
  0xa9   :  { %v225_v2 = vadd.f32 %v209_v58, %v125_v0 }
  0xaa   :  { %v263_v5 = vpop.permute.xlu0 %262  ;;  %v72_v6 = vpop.permute.xlu1 %71 }
  0xab   :  { %v336_v8 = vadd.f32 %v263_v5, %v224_v3  ;;  %v337_v9 = vadd.f32 %v268_v62, %v225_v2  ;;  %v129_v41 = vmul.f32 %v762_v53, %v72_v6 }
  0xad   :  { %v352_v10 = vmax.f32 %v336_v8, 0.0  ;;  %v353_v18 = vmax.f32 %v337_v9, 0.0  ;;  %v229_v50 = vadd.f32 %v213_v39, %v129_v41 }
  0xae   :  { %v273_v13 = vpop.permute.xlu0 %272  ;;  %v77_v14 = vpop.permute.xlu1 %76 }
  0xaf   :  { %v338_v15 = vadd.f32 %v273_v13, %v226_v11  ;;  %v515_v16 = vpack.c.bf16 %v352_v10, %v351_v12  ;;  %v130_v38 = vmul.f32 %v762_v53, %v77_v14 }
  0xb1   :  { %v354_v20 = vmax.f32 %v338_v15, 0.0  ;;  %516 = vmatpush3.bf16.msra.mxu0 %v515_v16  ;;  %v217_v15 = vmul.f32 %v757_v52, %v748_v45 }
  0xb2   :  { %517 = vmatprep.subr.bf16.mxu0 %v588_v19  ;;  %v283_v26 = vpop.permute.xlu0 %282 }
  0xb3   :  { %v518_v24 = vpack.c.bf16 %v354_v20, %v353_v18  ;;  %v169_v25 = vpop.permute.xlu1 %168  ;;  %v340_v28 = vadd.f32 %v283_v26, %v228_v27 }
  0xb4   :  { %v214_v37 = vmul.f32 %v757_v52, %v169_v25 }
  0xb5   :  { %519 = vmatpush3.bf16.msra.mxu0 %v518_v24  ;;  %v356_v32 = vmax.f32 %v340_v28, 0.0 }
  0xb6   :  { %520 = vmatprep.subr.bf16.mxu0 %v588_v19  ;;  %v230_v43 = vadd.f32 %v214_v37, %v130_v38  ;;  %v293_v46 = vpop.permute.xlu0 %292  ;;  %v221_v38 = vmul.f32 %v757_v52, %v752_v49  ;;  %v367_v49 = vld [vmem:[%s826_s3] sm:$0xff] }
  0xb8   :  { %v278_v30 = vpop.permute.xlu1 %277  ;;  %v342_v48 = vadd.f32 %v293_v46, %v230_v43 }
  0xb9   :  { %v339_v31 = vadd.f32 %v278_v30, %v227_v29 }
  0xba   :  { %v358_v55 = vmax.f32 %v342_v48, 0.0  ;;  %v303_v1 = vpop.permute.xlu0 %302 }
  0xbb   :  { %v355_v33 = vmax.f32 %v339_v31, 0.0  ;;  %v219_v31 = vmul.f32 %v757_v52, %v750_v47 }
  0xbc   :  { %v82_v34 = vpop.permute.xlu1 %81 }
  0xbd   :  { %v521_v35 = vpack.c.bf16 %v356_v32, %v355_v33  ;;  %v131_v62 = vmul.f32 %v762_v53, %v82_v34 }
  0xbe   :  { %v313_v16 = vpop.permute.xlu0 %312 }
  0xbf   :  { %522 = vmatpush3.bf16.msra.mxu0 %v521_v35  ;;  %v231_v3 = vadd.f32 %v215_v61, %v131_v62 }
  0xc0   :  { %v87_v36 = vpop.permute.xlu1 %86  ;;  %523 = vmatprep.subr.bf16.mxu0 %v588_v19 }
  0xc1   :  { %v132_v40 = vmul.f32 %v762_v53, %v87_v36 }
  0xc2   :  { %v323_v32 = vpop.permute.xlu0 %322 }
  0xc5   :  { %v177_v44 = vpop.permute.xlu1 %176 }
  0xc6   :  { %v216_v60 = vmul.f32 %v757_v52, %v177_v44 }
  0xc8   :  { %v232_v63 = vadd.f32 %v216_v60, %v132_v40 }
  0xca   :  { %v288_v51 = vpop.permute.xlu1 %287  ;;  %v344_v2 = vadd.f32 %v303_v1, %v232_v63 }
  0xcb   :  { %v341_v54 = vadd.f32 %v288_v51, %v229_v50 }
  0xcc   :  { %v360_v6 = vmax.f32 %v344_v2, 0.0 }
  0xcd   :  { %v357_v56 = vmax.f32 %v341_v54, 0.0 }
  0xce   :  { %v92_v57 = vpop.permute.xlu1 %91 }
  0xcf   :  { %v524_v58 = vpack.c.bf16 %v358_v55, %v357_v56  ;;  %v133_v12 = vmul.f32 %v762_v53, %v92_v57 }
  0xd1   :  { %525 = vmatpush3.bf16.msra.mxu0 %v524_v58  ;;  %v233_v18 = vadd.f32 %v217_v15, %v133_v12 }
  0xd2   :  { %v97_v59 = vpop.permute.xlu1 %96  ;;  %526 = vmatprep.subr.bf16.mxu0 %v588_v19 }
  0xd3   :  { %v134_v42 = vmul.f32 %v762_v53, %v97_v59 }
  0xd7   :  { %v185_v0 = vpop.permute.xlu1 %184 }
  0xd8   :  { %v218_v11 = vmul.f32 %v757_v52, %v185_v0 }
  0xda   :  { %v234_v13 = vadd.f32 %v218_v11, %v134_v42 }
  0xdc   :  { %v298_v4 = vpop.permute.xlu1 %297  ;;  %v346_v17 = vadd.f32 %v313_v16, %v234_v13 }
  0xdd   :  { %v343_v5 = vadd.f32 %v298_v4, %v231_v3 }
  0xde   :  { %v362_v22 = vmax.f32 %v346_v17, 0.0 }
  0xdf   :  { %v359_v7 = vmax.f32 %v343_v5, 0.0 }
  0xe0   :  { %v102_v8 = vpop.permute.xlu1 %101 }
  0xe1   :  { %v527_v9 = vpack.c.bf16 %v360_v6, %v359_v7  ;;  %v135_v29 = vmul.f32 %v762_v53, %v102_v8 }
  0xe3   :  { %528 = vmatpush3.bf16.msra.mxu0 %v527_v9  ;;  %v235_v34 = vadd.f32 %v219_v31, %v135_v29 }
  0xe4   :  { %v107_v10 = vpop.permute.xlu1 %106  ;;  %529 = vmatprep.subr.bf16.mxu0 %v588_v19 }
  0xe5   :  { %v136_v28 = vmul.f32 %v762_v53, %v107_v10 }
  0xe9   :  { %v193_v14 = vpop.permute.xlu1 %192 }
  0xea   :  { %v220_v27 = vmul.f32 %v757_v52, %v193_v14 }
  0xec   :  { %v236_v45 = vadd.f32 %v220_v27, %v136_v28 }
  0xee   :  { %v308_v20 = vpop.permute.xlu1 %307  ;;  %v348_v33 = vadd.f32 %v323_v32, %v236_v45 }
  0xef   :  { %v345_v21 = vadd.f32 %v308_v20, %v233_v18 }
  0xf0   :  { %v364_v43 = vmax.f32 %v348_v33, 0.0 }
  0xf1   :  { %v361_v23 = vmax.f32 %v345_v21, 0.0 }
  0xf2   :  { %v112_v24 = vpop.permute.xlu1 %111 }
  0xf3   :  { %v530_v25 = vpack.c.bf16 %v362_v22, %v361_v23  ;;  %v137_v36 = vmul.f32 %v762_v53, %v112_v24 }
  0xf5   :  { %531 = vmatpush3.bf16.msra.mxu0 %v530_v25  ;;  %v237_v50 = vadd.f32 %v221_v38, %v137_v36 }
  0xf6   :  { %v117_v26 = vpop.permute.xlu1 %116  ;;  %532 = vmatprep.subr.bf16.mxu0 %v588_v19 }
  0xf7   :  { %v138_v46 = vmul.f32 %v762_v53, %v117_v26 }
  0xfb   :  { %v201_v30 = vpop.permute.xlu1 %200 }
  0xfc   :  { %v222_v39 = vmul.f32 %v757_v52, %v201_v30  ;;  %v372_v52 = vpop.permute.xlu0 %371 }
  0xfe   :  { %v238_v51 = vadd.f32 %v222_v39, %v138_v46 }
 0x100   :  { %v318_v35 = vpop.permute.xlu1 %317 }
 0x101   :  { %v347_v37 = vadd.f32 %v318_v35, %v235_v34 }
 0x103   :  { %v363_v41 = vmax.f32 %v347_v37, 0.0 }
 0x104   :  { %v328_v44 = vpop.permute.xlu1 %327 }
 0x105   :  { %v533_v48 = vpack.c.bf16 %v364_v43, %v363_v41  ;;  %v349_v47 = vadd.f32 %v328_v44, %v237_v50 }
 0x107   :  { %534 = vmatpush3.bf16.msra.mxu0 %v533_v48  ;;  %v365_v56 = vmax.f32 %v349_v47, 0.0 }
 0x108   :  { %v333_v54 = vpop.permute.xlu1 %332  ;;  %535 = vmatprep.subr.bf16.mxu0 %v588_v19 }
 0x109   :  { %v350_v55 = vadd.f32 %v333_v54, %v238_v51 }
 0x10b   :  { %v366_v57 = vmax.f32 %v350_v55, 0.0 }
 0x10d   :  { %v536_v58 = vpack.c.bf16 %v366_v57, %v365_v56 }
 0x10f   :  { %537 = vmatpush3.bf16.msra.mxu0 %v536_v58 }
 0x112   :  { %512 = vmatmul.mubr.f32.vlgmr.msra.gmra.mrb[0].mxu0 %v367_v49 }
 0x1e5   :  { %v440_v53 = vpop.f32.mrb[0].mxu0 }
 0x1e6   :  { %v441_v59 = vadd.f32 %v440_v53, %v372_v52  ;;  %v513_v60 = vpop.f32.mrb[1].mxu0 }
 0x1e8   :  { %445 = vst.msk [vmem:[#allocation2] sm:$0xff] %vm444_vm1, %v441_v59 }
 0x1e9   :  { %573 = shalt.err (!%p570_p4)
}
 0x1ea   :  { %s574_s3 = scalar_lea.hbm %s828_s5, 128 }
 0x1eb   :  { %p575_p5 = scmp.ne.s32.totalorder %s828_s5, %s574_s3  ;;  %p578_p6 = scmp.lt.u32.totalorder %s574_s3, %s828_s5 }
 0x1ed   :  { %p580_p7 = pnand %p578_p6, %p575_p5 }
 0x1ef   :  { %583 = shalt.err (!%p580_p7)
}
 0x1f0   :  { %455 = dma.vmem_to_hbm [thread:$0]  %s453_s12, 128, %s828_s5, [#allocation3]  }
 0x1f1   :  { %584 = dma.done.wait [#allocation3], 128  }
 0x1f2   :  { %585 = vsyncadd [#allocation3], 4294967168 }
 0x1f3   :  { %459 = vsyncpa [#allocation3], 1 }

</bundles_post_ra>
